<compile_context>
chip_gen: v7x
topology: tpu7x:2x2x1
jax: 0.10.0
libtpu: 0.0.40
codegen_flags: <defaults>
</compile_context>

<pallas_src>
import functools
import math

import jax
import jax.numpy as jnp
import numpy as np
from jax.experimental import pallas as pl
from jax.experimental.pallas import tpu as pltpu

SPEED = 2.0
EPS = 1e-6
LOG_STD_MIN = -20.0
LOG_STD_MAX = 2.0
LOG_2PI = math.log(2.0 * math.pi)

MID = 128      # lane-padded hidden width
HEAD = 128     # lane-padded per-head output width
ALIGN = 16     # row alignment satisfying f32 (8,128) and bf16 (16,128) tiling
TB_CAP = 1024  # batch-tile cap; keeps double-buffered tiles + temporaries far
               # below every generation's scoped-VMEM default


def _round_up(v, m):
    return ((v + m - 1) // m) * m


def _pad_to(a, shape):
    return jnp.pad(a, [(0, s - d) for d, s in zip(a.shape, shape)])


def _choose_tb(b_pad):
    # >=2 grid steps when the batch allows it (v7x has 2 TensorCores that the
    # "parallel" grid axis shards across), capped at TB_CAP rows.
    tb = _round_up(pl.cdiv(b_pad, 2), ALIGN)
    return max(ALIGN, min(TB_CAP, tb))


# --------------------------------------------------------------------------- #
# Kernel
# --------------------------------------------------------------------------- #
def actor_kernel(x_ref, noise_ref, w1_ref, b1_ref, w2_ref, b2_ref, wh_ref, bh_ref,
                 out_ref, *, n_out, tail_dtype):
    mxu_dtype = w1_ref.dtype              # bf16 (perf path) or f32 (parity path)
    x = x_ref[...]                        # already in mxu dtype (no cast here)
    noise = noise_ref[...].astype(jnp.float32)   # bf16 stream -> f32 math

    # l1 + ReLU (MXU in mxu_dtype, f32 accumulate + elementwise)
    h1 = jnp.dot(x, w1_ref[...], preferred_element_type=jnp.float32)
    h1 = jnp.maximum(h1 + b1_ref[...], 0.0)

    # l2 + ReLU
    h2 = jnp.dot(h1.astype(mxu_dtype), w2_ref[...],
                 preferred_element_type=jnp.float32)
    h2 = jnp.maximum(h2 + b2_ref[...], 0.0)

    # fused [mean | log_std] head: one MXU push, lane-aligned (128) slices.
    head = jnp.dot(h2.astype(mxu_dtype), wh_ref[...],
                   preferred_element_type=jnp.float32) + bh_ref[...]
    mean = head[:, :HEAD]
    log_std = jnp.clip(head[:, HEAD:], LOG_STD_MIN, LOG_STD_MAX)

    # Transcendental (EUP) tail; tail_dtype=bf16 on v6e/v7x roughly doubles
    # exp/tanh/log throughput, f32 on v5e. Accumulations stay f32.
    std = jnp.exp(log_std.astype(tail_dtype)).astype(jnp.float32)
    a = mean + std * noise
    y = jnp.tanh(a.astype(tail_dtype)).astype(jnp.float32)
    action = y * SPEED

    squash = jnp.log((SPEED * (1.0 - y * y) + EPS).astype(tail_dtype))
    squash = squash.astype(jnp.float32)

    # log N(a; mean, std) simplified:
    #   -0.5*log(2*pi*std^2) - (a-mean)^2/(2*std^2)
    #     = -0.5*log(2*pi) - log_std - 0.5*noise^2
    log_prob = (-0.5 * LOG_2PI) - log_std - 0.5 * noise * noise - squash

    # Padded noise lanes are zero (wrapper invariant) and padded weight/bias
    # columns are zero, so padded lanes are finite; mask them out of the sum.
    valid = jax.lax.broadcasted_iota(jnp.int32, log_prob.shape, 1) < n_out
    logp = jnp.sum(jnp.where(valid, log_prob, 0.0), axis=1, keepdims=True)

    # Single lane-dense output slab: real action lanes carry y*SPEED, every
    # padded lane carries the per-row log-prob (wrapper reads lane HEAD-1).
    out_ref[...] = jnp.where(
        valid, action, jnp.broadcast_to(logp, action.shape)).astype(out_ref.dtype)


# --------------------------------------------------------------------------- #
# Parameter packing (pad to lane-dense shapes, fuse the two heads)
# --------------------------------------------------------------------------- #
def pack_params(params, matmul_dtype=jnp.bfloat16, tail_dtype=None):
    """Pad/fuse the Actor weights.

    matmul_dtype: bf16 (v6e/v7x perf path) or f32 (parity path).
    tail_dtype:   precision of the exp/tanh/log tail; defaults to matmul_dtype.
                  Use jnp.float32 on v5e (no bf16 EUP/VPU).
    """
    if tail_dtype is None:
        tail_dtype = jnp.bfloat16 if matmul_dtype == jnp.bfloat16 else jnp.float32

    n_in, n_mid = params["w1"].shape
    n_out = params["wm"].shape[1]
    assert n_mid <= MID and 1 <= n_out < HEAD   # lane HEAD-1 carries the logp

    w1 = _pad_to(params["w1"], (n_in, MID)).astype(matmul_dtype)
    b1 = _pad_to(params["b1"], (1, MID)).astype(jnp.float32)
    w2 = _pad_to(params["w2"], (MID, MID)).astype(matmul_dtype)
    b2 = _pad_to(params["b2"], (1, MID)).astype(jnp.float32)

    # TODO(synk): on v5e the head could be packed into a single 128-lane output
    # ([wm|ws] at lane 64) to halve the head matmul; skipped (sub-128 slices).
    wh = jnp.concatenate([_pad_to(params["wm"], (n_mid, HEAD)),
                          _pad_to(params["ws"], (n_mid, HEAD))], axis=1)
    wh = _pad_to(wh, (MID, 2 * HEAD)).astype(matmul_dtype)
    bh = jnp.concatenate([_pad_to(params["bm"], (1, HEAD)),
                          _pad_to(params["bs"], (1, HEAD))], axis=1)
    bh = bh.astype(jnp.float32)
    return dict(w1=w1, b1=b1, w2=w2, b2=b2, wh=wh, bh=bh,
                n_out=n_out, tail_dtype=tail_dtype)


# --------------------------------------------------------------------------- #
# Wrapper
# --------------------------------------------------------------------------- #
def actor_forward(x, packed, noise):
    B, n_in = x.shape
    n_out = packed["n_out"]
    matmul_dtype = packed["w1"].dtype
    tail_dtype = packed["tail_dtype"]

    B_pad = _round_up(B, ALIGN)
    TB = _choose_tb(B_pad)
    num_steps = pl.cdiv(B_pad, TB)

    # x streamed in the matmul dtype; noise streamed as bf16 (it only feeds the
    # f32 elementwise tail). Padded rows/lanes are exact zeros (kernel invariant).
    x_p = _pad_to(x, (B_pad, n_in)).astype(matmul_dtype)
    noise_p = _pad_to(noise, (B_pad, HEAD)).astype(jnp.bfloat16)

    weight_keys = ("w1", "b1", "w2", "b2", "wh", "bh")
    weight_bytes = sum(int(packed[k].size) * packed[k].dtype.itemsize
                       for k in weight_keys)
    rows = num_steps * TB
    cost = pl.CostEstimate(
        flops=2 * rows * MID * (n_in + MID + 2 * HEAD),
        transcendentals=3 * rows * HEAD,            # exp, tanh, log per lane
        bytes_accessed=int(x_p.size * x_p.dtype.itemsize
                           + noise_p.size * noise_p.dtype.itemsize
                           + B_pad * HEAD * 4 + weight_bytes),
    )

    kernel = functools.partial(actor_kernel, n_out=n_out, tail_dtype=tail_dtype)

    out = pl.pallas_call(
        kernel,
        out_shape=jax.ShapeDtypeStruct((B_pad, HEAD), jnp.float32),
        grid_spec=pltpu.PrefetchScalarGridSpec(
            num_scalar_prefetch=0,
            grid=(num_steps,),
            in_specs=[
                pl.BlockSpec((TB, n_in), lambda i: (i, 0)),       # x tile
                pl.BlockSpec((TB, HEAD), lambda i: (i, 0)),       # noise tile
                pl.BlockSpec((n_in, MID), lambda i: (0, 0)),      # w1 (resident)
                pl.BlockSpec((1, MID), lambda i: (0, 0)),         # b1
                pl.BlockSpec((MID, MID), lambda i: (0, 0)),       # w2
                pl.BlockSpec((1, MID), lambda i: (0, 0)),         # b2
                pl.BlockSpec((MID, 2 * HEAD), lambda i: (0, 0)),  # fused heads
                pl.BlockSpec((1, 2 * HEAD), lambda i: (0, 0)),    # fused bias
            ],
            out_specs=pl.BlockSpec((TB, HEAD), lambda i: (i, 0)), # action+logp slab
        ),
        compiler_params=pltpu.CompilerParams(
            dimension_semantics=("parallel",)),
        cost_estimate=cost,
    )(x_p, noise_p, packed["w1"], packed["b1"], packed["w2"], packed["b2"],
      packed["wh"], packed["bh"])

    action = out[:B, :n_out]
    log_prob = out[:B, HEAD - 1:HEAD]     # every padded lane holds the row logp
    return action, log_prob


# --------------------------------------------------------------------------- #
# Init + float64 numpy reference (literal torch expressions)
# --------------------------------------------------------------------------- #
def init_params(key, n_in, n_mid, n_out):
    """Deterministic nn.Linear-style init (uniform +/- 1/sqrt(fan_in))."""
    def linear(k, fan_in, fan_out):
        kw, kb = jax.random.split(k)
        bound = 1.0 / jnp.sqrt(fan_in)
        w = jax.random.uniform(kw, (fan_in, fan_out), jnp.float32, -bound, bound)
        b = jax.random.uniform(kb, (1, fan_out), jnp.float32, -bound, bound)
        return w, b

    k1, k2, k3, k4 = jax.random.split(key, 4)
    w1, b1 = linear(k1, n_in, n_mid)
    w2, b2 = linear(k2, n_mid, n_mid)
    wm, bm = linear(k3, n_mid, n_out)
    ws, bs = linear(k4, n_mid, n_out)
    return dict(w1=w1, b1=b1, w2=w2, b2=b2, wm=wm, bm=bm, ws=ws, bs=bs)


def actor_reference_np(x, params, noise):
    p = {k: np.asarray(v, np.float64) for k, v in params.items()}
    x = np.asarray(x, np.float64)
    noise = np.asarray(noise, np.float64)
    h1 = np.maximum(x @ p["w1"] + p["b1"], 0.0)
    h2 = np.maximum(h1 @ p["w2"] + p["b2"], 0.0)
    mean = h2 @ p["wm"] + p["bm"]
    log_std = np.clip(h2 @ p["ws"] + p["bs"], LOG_STD_MIN, LOG_STD_MAX)
    std = np.exp(log_std)
    a = mean + std * noise
    log_prob = (-0.5 * np.log(2.0 * np.pi * std ** 2)
                - (a - mean) ** 2 / (2.0 * std ** 2))
    y = np.tanh(a)
    action = y * SPEED
    log_prob = log_prob - np.log(SPEED * (1.0 - y ** 2) + EPS)
    return action, log_prob.sum(axis=1, keepdims=True)


# --------------------------------------------------------------------------- #
# Demo / self-test
# --------------------------------------------------------------------------- #
if __name__ == "__main__":
    n_in, n_mid, n_out = 8, 32, 4

    key = jax.random.PRNGKey(0)
    k_params, k_data = jax.random.split(key)
    params = init_params(k_params, n_in, n_mid, n_out)

    # batch=2 -> single grid step; batch=40 -> 2 steps with a ragged last block
    for batch in (2, 40):
        kx, kn = jax.random.split(jax.random.fold_in(k_data, batch))
        x = jax.random.normal(kx, (batch, n_in), jnp.float32)
        noise = jax.random.normal(kn, (batch, n_out), jnp.float32)

        # The kernel streams noise as bf16, so quantize it for the reference too
        # (the kernel then sees bit-identical noise values).
        noise_q = noise.astype(jnp.bfloat16).astype(jnp.float32)
        action_ref, logp_ref = actor_reference_np(x, params, noise_q)

        # f32 matmul + f32 tail: tight structural/algebraic check.
        packed_f32 = pack_params(params, matmul_dtype=jnp.float32)
        a32, lp32 = actor_forward(x, packed_f32, noise_q)
        jax.block_until_ready((a32, lp32))
        np.testing.assert_allclose(np.asarray(a32), action_ref, rtol=1e-3, atol=1e-3)
        np.testing.assert_allclose(np.asarray(lp32), logp_ref, rtol=1e-3, atol=1e-3)

        # bf16 matmul + bf16 transcendental tail (v6e/v7x perf config): loose check.
        packed_bf16 = pack_params(params, matmul_dtype=jnp.bfloat16)
        action, log_prob = actor_forward(x, packed_bf16, noise_q)
        jax.block_until_ready((action, log_prob))

        assert action.shape == (batch, n_out)
        assert log_prob.shape == (batch, 1)
        np.testing.assert_allclose(np.asarray(action), action_ref, rtol=5e-2, atol=1e-1)
        np.testing.assert_allclose(np.asarray(log_prob), logp_ref, rtol=5e-2, atol=2e-1)

    print("KERNEL_OK")
</pallas_src>

<mosaic_0001>
module attributes {stable_mosaic.version = 11 : i64} {
  func.func @actor_kernel(%arg0: i32, %arg1: memref<16x8xf32, #tpu.memory_space<vmem>>, %arg2: memref<16x128xbf16, #tpu.memory_space<vmem>>, %arg3: memref<8x128xf32, #tpu.memory_space<vmem>>, %arg4: memref<1x128xf32, #tpu.memory_space<vmem>>, %arg5: memref<128x128xf32, #tpu.memory_space<vmem>>, %arg6: memref<1x128xf32, #tpu.memory_space<vmem>>, %arg7: memref<128x256xf32, #tpu.memory_space<vmem>>, %arg8: memref<1x256xf32, #tpu.memory_space<vmem>>, %arg9: memref<16x128xf32, #tpu.memory_space<vmem>>) attributes {dimension_semantics = [#tpu.dimension_semantics<parallel>], iteration_bounds = array<i64: 1>, scalar_prefetch = 0 : i64, scratch_operands = 0 : i64, tpu.core_type = #tpu.core_type<tc>, window_params = [{transform_indices = @transform_0, window_bounds = array<i64: 16, 8>}, {transform_indices = @transform_1, window_bounds = array<i64: 16, 128>}, {pipeline_mode = #tpu.pipeline_mode<synchronous>, transform_indices = @transform_2, window_bounds = array<i64: 8, 128>}, {pipeline_mode = #tpu.pipeline_mode<synchronous>, transform_indices = @transform_3, window_bounds = array<i64: 1, 128>}, {pipeline_mode = #tpu.pipeline_mode<synchronous>, transform_indices = @transform_4, window_bounds = array<i64: 128, 128>}, {pipeline_mode = #tpu.pipeline_mode<synchronous>, transform_indices = @transform_5, window_bounds = array<i64: 1, 128>}, {pipeline_mode = #tpu.pipeline_mode<synchronous>, transform_indices = @transform_6, window_bounds = array<i64: 128, 256>}, {pipeline_mode = #tpu.pipeline_mode<synchronous>, transform_indices = @transform_7, window_bounds = array<i64: 1, 256>}, {transform_indices = @transform_8, window_bounds = array<i64: 16, 128>}]} {
    %c0 = arith.constant 0 : index
    %c0_0 = arith.constant 0 : index
    %0 = vector.load %arg1[%c0, %c0_0] : memref<16x8xf32, #tpu.memory_space<vmem>>, vector<16x8xf32>
    %c0_1 = arith.constant 0 : index
    %c0_2 = arith.constant 0 : index
    %1 = vector.load %arg2[%c0_1, %c0_2] : memref<16x128xbf16, #tpu.memory_space<vmem>>, vector<16x128xbf16>
    %2 = arith.extf %1 : vector<16x128xbf16> to vector<16x128xf32>
    %c0_3 = arith.constant 0 : index
    %c0_4 = arith.constant 0 : index
    %3 = vector.load %arg3[%c0_3, %c0_4] : memref<8x128xf32, #tpu.memory_space<vmem>>, vector<8x128xf32>
    %cst = arith.constant dense<0.000000e+00> : vector<16x128xf32>
    %4 = tpu.matmul %0, %3, %cst {dimension_numbers = #tpu.dot_dimension_numbers<[1], [0], [0], [1], [0, 0, 1, 1], [], []>} : vector<16x8xf32>, vector<8x128xf32>, vector<16x128xf32> -> vector<16x128xf32>
    %c0_5 = arith.constant 0 : index
    %c0_6 = arith.constant 0 : index
    %5 = vector.load %arg4[%c0_5, %c0_6] : memref<1x128xf32, #tpu.memory_space<vmem>>, vector<1x128xf32>
    %6 = vector.broadcast %5 : vector<1x128xf32> to vector<16x128xf32>
    %7 = arith.addf %4, %6 : vector<16x128xf32>
    %cst_7 = arith.constant 0.000000e+00 : f32
    %8 = vector.broadcast %cst_7 : f32 to vector<16x128xf32>
    %9 = arith.maximumf %7, %8 : vector<16x128xf32>
    %c0_8 = arith.constant 0 : index
    %c0_9 = arith.constant 0 : index
    %10 = vector.load %arg5[%c0_8, %c0_9] : memref<128x128xf32, #tpu.memory_space<vmem>>, vector<128x128xf32>
    %cst_10 = arith.constant dense<0.000000e+00> : vector<16x128xf32>
    %11 = tpu.matmul %9, %10, %cst_10 {dimension_numbers = #tpu.dot_dimension_numbers<[1], [0], [0], [1], [0, 0, 1, 1], [], []>} : vector<16x128xf32>, vector<128x128xf32>, vector<16x128xf32> -> vector<16x128xf32>
    %c0_11 = arith.constant 0 : index
    %c0_12 = arith.constant 0 : index
    %12 = vector.load %arg6[%c0_11, %c0_12] : memref<1x128xf32, #tpu.memory_space<vmem>>, vector<1x128xf32>
    %13 = vector.broadcast %12 : vector<1x128xf32> to vector<16x128xf32>
    %14 = arith.addf %11, %13 : vector<16x128xf32>
    %cst_13 = arith.constant 0.000000e+00 : f32
    %15 = vector.broadcast %cst_13 : f32 to vector<16x128xf32>
    %16 = arith.maximumf %14, %15 : vector<16x128xf32>
    %c0_14 = arith.constant 0 : index
    %c0_15 = arith.constant 0 : index
    %17 = vector.load %arg7[%c0_14, %c0_15] : memref<128x256xf32, #tpu.memory_space<vmem>>, vector<128x256xf32>
    %cst_16 = arith.constant dense<0.000000e+00> : vector<16x256xf32>
    %18 = tpu.matmul %16, %17, %cst_16 {dimension_numbers = #tpu.dot_dimension_numbers<[1], [0], [0], [1], [0, 0, 1, 1], [], []>} : vector<16x128xf32>, vector<128x256xf32>, vector<16x256xf32> -> vector<16x256xf32>
    %c0_17 = arith.constant 0 : index
    %c0_18 = arith.constant 0 : index
    %19 = vector.load %arg8[%c0_17, %c0_18] : memref<1x256xf32, #tpu.memory_space<vmem>>, vector<1x256xf32>
    %20 = vector.broadcast %19 : vector<1x256xf32> to vector<16x256xf32>
    %21 = arith.addf %18, %20 : vector<16x256xf32>
    %22 = vector.extract_strided_slice %21 {offsets = [0, 0], sizes = [16, 128], strides = [1, 1]} : vector<16x256xf32> to vector<16x128xf32>
    %23 = vector.extract_strided_slice %21 {offsets = [0, 128], sizes = [16, 128], strides = [1, 1]} : vector<16x256xf32> to vector<16x128xf32>
    %cst_19 = arith.constant -2.000000e+01 : f32
    %cst_20 = arith.constant 2.000000e+00 : f32
    %24 = vector.broadcast %cst_19 : f32 to vector<16x128xf32>
    %25 = arith.maximumf %24, %23 : vector<16x128xf32>
    %26 = vector.broadcast %cst_20 : f32 to vector<16x128xf32>
    %27 = arith.minimumf %26, %25 : vector<16x128xf32>
    %28 = math.exp %27 : vector<16x128xf32>
    %29 = arith.mulf %28, %2 : vector<16x128xf32>
    %30 = arith.addf %22, %29 : vector<16x128xf32>
    %31 = math.tanh %30 : vector<16x128xf32>
    %cst_21 = arith.constant 2.000000e+00 : f32
    %32 = vector.broadcast %cst_21 : f32 to vector<16x128xf32>
    %33 = arith.mulf %31, %32 : vector<16x128xf32>
    %34 = arith.mulf %31, %31 : vector<16x128xf32>
    %cst_22 = arith.constant 1.000000e+00 : f32
    %35 = vector.broadcast %cst_22 : f32 to vector<16x128xf32>
    %36 = arith.subf %35, %34 : vector<16x128xf32>
    %cst_23 = arith.constant 2.000000e+00 : f32
    %37 = vector.broadcast %cst_23 : f32 to vector<16x128xf32>
    %38 = arith.mulf %37, %36 : vector<16x128xf32>
    %cst_24 = arith.constant 9.99999997E-7 : f32
    %39 = vector.broadcast %cst_24 : f32 to vector<16x128xf32>
    %40 = arith.addf %38, %39 : vector<16x128xf32>
    %41 = math.log %40 : vector<16x128xf32>
    %cst_25 = arith.constant -0.918938517 : f32
    %42 = vector.broadcast %cst_25 : f32 to vector<16x128xf32>
    %43 = arith.subf %42, %27 : vector<16x128xf32>
    %cst_26 = arith.constant 5.000000e-01 : f32
    %44 = vector.broadcast %cst_26 : f32 to vector<16x128xf32>
    %45 = arith.mulf %44, %2 : vector<16x128xf32>
    %46 = arith.mulf %45, %2 : vector<16x128xf32>
    %47 = arith.subf %43, %46 : vector<16x128xf32>
    %48 = arith.subf %47, %41 : vector<16x128xf32>
    %49 = tpu.iota {dimensions = array<i32: 1>} : vector<16x128xi32>
    %c4_i32 = arith.constant 4 : i32
    %50 = vector.broadcast %c4_i32 : i32 to vector<16x128xi32>
    %51 = arith.cmpi slt, %49, %50 : vector<16x128xi32>
    %cst_27 = arith.constant 0.000000e+00 : f32
    %52 = vector.broadcast %cst_27 : f32 to vector<16x128xf32>
    %53 = arith.select %51, %48, %52 : vector<16x128xi1>, vector<16x128xf32>
    %cst_28 = arith.constant dense<0.000000e+00> : vector<16xf32>
    %54 = vector.multi_reduction <add>, %53, %cst_28 [1] : vector<16x128xf32> to vector<16xf32>
    %55 = vector.shape_cast %54 : vector<16xf32> to vector<16x1xf32>
    %56 = vector.shape_cast %55 : vector<16x1xf32> to vector<16x1xf32>
    %57 = vector.broadcast %56 : vector<16x1xf32> to vector<16x128xf32>
    %58 = arith.select %51, %33, %57 : vector<16x128xi1>, vector<16x128xf32>
    %c0_29 = arith.constant 0 : index
    %c0_30 = arith.constant 0 : index
    %59 = vector.load %arg9[%c0_29, %c0_30] : memref<16x128xf32, #tpu.memory_space<vmem>>, vector<16x128xf32>
    tpu.vector_store %arg9[%c0_29, %c0_30], %58 {strides = array<i32>} : memref<16x128xf32, #tpu.memory_space<vmem>>, vector<16x128xf32>,
    return
  }
  func.func @transform_0(%arg0: i32) -> (i32, i32) {
    %c0_i32 = arith.constant 0 : i32
    %c0_i32_0 = arith.constant 0 : i32
    return %arg0, %c0_i32 : i32, i32
  }
  func.func @transform_1(%arg0: i32) -> (i32, i32) {
    %c0_i32 = arith.constant 0 : i32
    %c0_i32_0 = arith.constant 0 : i32
    return %arg0, %c0_i32 : i32, i32
  }
  func.func @transform_2(%arg0: i32) -> (i32, i32) {
    %c0_i32 = arith.constant 0 : i32
    %c0_i32_0 = arith.constant 0 : i32
    %c0_i32_1 = arith.constant 0 : i32
    return %c0_i32, %c0_i32_0 : i32, i32
  }
  func.func @transform_3(%arg0: i32) -> (i32, i32) {
    %c0_i32 = arith.constant 0 : i32
    %c0_i32_0 = arith.constant 0 : i32
    %c0_i32_1 = arith.constant 0 : i32
    return %c0_i32, %c0_i32_0 : i32, i32
  }
  func.func @transform_4(%arg0: i32) -> (i32, i32) {
    %c0_i32 = arith.constant 0 : i32
    %c0_i32_0 = arith.constant 0 : i32
    %c0_i32_1 = arith.constant 0 : i32
    return %c0_i32, %c0_i32_0 : i32, i32
  }
  func.func @transform_5(%arg0: i32) -> (i32, i32) {
    %c0_i32 = arith.constant 0 : i32
    %c0_i32_0 = arith.constant 0 : i32
    %c0_i32_1 = arith.constant 0 : i32
    return %c0_i32, %c0_i32_0 : i32, i32
  }
  func.func @transform_6(%arg0: i32) -> (i32, i32) {
    %c0_i32 = arith.constant 0 : i32
    %c0_i32_0 = arith.constant 0 : i32
    %c0_i32_1 = arith.constant 0 : i32
    return %c0_i32, %c0_i32_0 : i32, i32
  }
  func.func @transform_7(%arg0: i32) -> (i32, i32) {
    %c0_i32 = arith.constant 0 : i32
    %c0_i32_0 = arith.constant 0 : i32
    %c0_i32_1 = arith.constant 0 : i32
    return %c0_i32, %c0_i32_0 : i32, i32
  }
  func.func @transform_8(%arg0: i32) -> (i32, i32) {
    %c0_i32 = arith.constant 0 : i32
    %c0_i32_0 = arith.constant 0 : i32
    return %arg0, %c0_i32 : i32, i32
  }
}

</mosaic_0001>

<bundles_post_ra>
// kernel: tpu_custom_call.1
= control target key start
LH: loop header
LB: loop body
LE: loop exit
PB: predicated region body
PF: predicated region fallthrough
CT: control target
= control target key end

     0   :  { %13 = vsyncpa [#allocation3], 0  ;;  %s791_s0 = inlined_call_operand.vmem [shape: f32[16,8], index: 0, kind: input, shape index: {}]   ;;  %s792_s1 = inlined_call_operand.vmem [shape: bf16[16,128], index: 1, kind: input, shape index: {}]   ;;  %s793_s2 = inlined_call_operand.vmem [shape: f32[8,128], index: 2, kind: input, shape index: {}]   ;;  %s794_s3 = inlined_call_operand.vmem [shape: f32[1,128], index: 3, kind: input, shape index: {}]   ;;  %s795_s4 = inlined_call_operand.hbm [shape: f32[128,128], index: 4, kind: input, shape index: {}]   ;;  %s796_s5 = inlined_call_operand.vmem [shape: f32[1,128], index: 5, kind: input, shape index: {}]   ;;  %s797_s6 = inlined_call_operand.hbm [shape: f32[128,256], index: 6, kind: input, shape index: {}]   ;;  %s798_s7 = inlined_call_operand.vmem [shape: f32[1,256], index: 7, kind: input, shape index: {}]   ;;  %s799_s8 = inlined_call_operand.hbm [shape: f32[16,128], index: 8, kind: output, shape index: {}]  }
   0x1   :  { %14 = vsyncpa [#allocation6], 0 }
   0x2   :  { %15 = vsyncpa [#allocation4], 0  ;;  %s671_s27 = smov [#allocation2]   ;;  %s599_s9 = scalar_lea.hbm %s795_s4, 2048 }
   0x3   :  { %s29_s28 = sshll.u32 %s671_s27, 4  ;;  %p600_p0 = scmp.ne.s32.totalorder %s795_s4, %s599_s9  ;;  %s30_s28 = int_to_ptr.vmem [resolvable:$true] %s29_s28 }
   0x4   :  { %p603_p1 = scmp.lt.u32.totalorder %s599_s9, %s795_s4 }
   0x6   :  { %p605_p2 = pnand %p603_p1, %p600_p0 }
   0x8   :  { %608 = shalt.err (!%p605_p2)
}
   0x9   :  { %s609_s14 = scalar_lea.vmem %s30_s28, 2048  ;;  %p614_p4 = scmp.lt.s32.totalorder %s30_s28, %s30_s28 }
   0xa   :  { %p610_p3 = scmp.ne.s32.totalorder %s30_s28, %s609_s14  ;;  %p615_p5 = scmp.lt.s32.totalorder %s609_s14, %s609_s14 }
   0xc   :  { %p616_p6 = por %p615_p5, %p614_p4 }
   0xe   :  { %p617_p7 = pnand %p616_p6, %p610_p3 }
  0x10   :  { %620 = shalt.err (!%p617_p7)
}
  0x11   :  { %s672_s15 = smov 128   ;;  %s673_s16 = smov 8  }
  0x12   :  { %35 = dma.hbm_to_vmem [thread:$0]  %s795_s4, 2048, %s30_s28, [#allocation3], %s672_s15, %s672_s15, %s673_s16  }
  0x13   :  { %s674_s19 = smov [#allocation5]   ;;  %s621_s23 = scalar_lea.hbm %s797_s6, 4096 }
  0x14   :  { %s43_s20 = sshll.u32 %s674_s19, 4  ;;  %p622_p8 = scmp.ne.s32.totalorder %s797_s6, %s621_s23  ;;  %s44_s20 = int_to_ptr.vmem [resolvable:$true] %s43_s20 }
  0x15   :  { %p625_p9 = scmp.lt.u32.totalorder %s621_s23, %s797_s6 }
  0x17   :  { %p627_p10 = pnand %p625_p9, %p622_p8 }
  0x19   :  { %630 = shalt.err (!%p627_p10)
}
  0x1a   :  { %s631_s29 = scalar_lea.vmem %s44_s20, 4096  ;;  %p636_p12 = scmp.lt.s32.totalorder %s44_s20, %s44_s20 }
  0x1b   :  { %p632_p11 = scmp.ne.s32.totalorder %s44_s20, %s631_s29  ;;  %p637_p13 = scmp.lt.s32.totalorder %s631_s29, %s631_s29 }
  0x1d   :  { %p638_p0 = por %p637_p13, %p636_p12 }
  0x1f   :  { %p639_p1 = pnand %p638_p0, %p632_p11 }
  0x21   :  { %642 = shalt.err (!%p639_p1)
}
  0x22   :  { %s675_s4 = smov 256   ;;  %s676_s28 = smov 16  }
  0x23   :  { %49 = dma.hbm_to_vmem [thread:$0]  %s797_s6, 4096, %s44_s20, [#allocation6], %s675_s4, %s675_s4, %s676_s28  }
  0x24   :  { %665 = dma.done.wait [#allocation3], 2048  }
  0x25   :  { %666 = vsyncadd [#allocation3], 4294965248 }
  0x26   :  { %667 = dma.done.wait [#allocation6], 4096  }
  0x27   :  { %668 = vsyncadd [#allocation6], 4294963200  ;;  %vm72_vm0 = vcmask 64512   ;;  %v64_v0 = vld [vmem:[%s793_s2] sm:$0xff]  ;;  %v59_v2 = vld [vmem:[%s791_s0 + $0x8] sm:$0xff] }
  0x28   :  { %v58_v1 = vld [vmem:[%s791_s0] sm:$0xff]  ;;  %475 = vmatprep.subr.mxu1 %v64_v0  ;;  %v157_v4 = vld [vmem:[#allocation2 + $0x8] sm:$0xff]  ;;  %v158_v5 = vld [vmem:[#allocation2 + $0x10] sm:$0xff] }
  0x29   :  { %477 = vmatprep.mubr.msk.f32.mxu1 %vm72_vm0, %v58_v1  ;;  %v156_v3 = vld [vmem:[#allocation2] sm:$0xff]  ;;  %476 = vmatpush3.msra.mxu1 %v64_v0  ;;  %v159_v7 = vld [vmem:[#allocation2 + $0x18] sm:$0xff]  ;;  %v161_v10 = vld [vmem:[#allocation2 + $0x28] sm:$0xff] }
  0x2a   :  { %v515_v6 = vpack.c.bf16 %v157_v4, %v156_v3  ;;  %478 = vmatmul.mubr.msk.f32.vlgmr.msra.gmra.mrb[0].mxu1 %vm72_vm0, %v59_v2  ;;  %v519_v8 = vpack.c.bf16 %v159_v7, %v158_v5  ;;  %v160_v9 = vld [vmem:[#allocation2 + $0x20] sm:$0xff]  ;;  %v162_v12 = vld [vmem:[#allocation2 + $0x30] sm:$0xff]  ;;  %v163_v13 = vld [vmem:[#allocation2 + $0x38] sm:$0xff] }
  0x2b   :  { %v523_v11 = vpack.c.bf16 %v161_v10, %v160_v9  ;;  %v527_v14 = vpack.c.bf16 %v163_v13, %v162_v12  ;;  %v164_v15 = vld [vmem:[#allocation2 + $0x40] sm:$0xff]  ;;  %v165_v16 = vld [vmem:[#allocation2 + $0x48] sm:$0xff]  ;;  %v166_v18 = vld [vmem:[#allocation2 + $0x50] sm:$0xff] }
  0x2c   :  { %516 = vmatprep.subr.bf16.mxu1 %v515_v6  ;;  %v531_v17 = vpack.c.bf16 %v165_v16, %v164_v15  ;;  %v167_v19 = vld [vmem:[#allocation2 + $0x58] sm:$0xff]  ;;  %v168_v21 = vld [vmem:[#allocation2 + $0x60] sm:$0xff]  ;;  %v169_v22 = vld [vmem:[#allocation2 + $0x68] sm:$0xff] }
  0x2d   :  { %518 = vmatpush3.bf16.msra.mxu1 %v515_v6  ;;  %v535_v20 = vpack.c.bf16 %v167_v19, %v166_v18  ;;  %v539_v23 = vpack.c.bf16 %v169_v22, %v168_v21  ;;  %v170_v24 = vld [vmem:[#allocation2 + $0x70] sm:$0xff]  ;;  %v171_v25 = vld [vmem:[#allocation2 + $0x78] sm:$0xff]  ;;  %v257_v27 = vld [vmem:[#allocation5 + $0x8] sm:$0xff]  ;;  %v677_v18 = vmov 0.0  }
  0x2e   :  { %520 = vmatprep.subr.bf16.mxu1 %v519_v8  ;;  %v543_v26 = vpack.c.bf16 %v171_v25, %v170_v24  ;;  %v259_v28 = vld [vmem:[#allocation5 + $0x18] sm:$0xff]  ;;  %v256_v29 = vld [vmem:[#allocation5] sm:$0xff]  ;;  %v258_v31 = vld [vmem:[#allocation5 + $0x10] sm:$0xff]  ;;  %364 = vmatprep.mubr.f32.mxu0 %v677_v18 }
  0x2f   :  { %v547_v30 = vpack.c.bf16 %v259_v28, %v257_v27  ;;  %v261_v32 = vld [vmem:[#allocation5 + $0x28] sm:$0xff]  ;;  %v263_v33 = vld [vmem:[#allocation5 + $0x38] sm:$0xff]  ;;  %v549_v34 = vpack.c.bf16 %v258_v31, %v256_v29  ;;  %v260_v36 = vld [vmem:[#allocation5 + $0x20] sm:$0xff] }
  0x30   :  { %v551_v35 = vpack.c.bf16 %v263_v33, %v261_v32  ;;  %v262_v37 = vld [vmem:[#allocation5 + $0x30] sm:$0xff]  ;;  %v265_v38 = vld [vmem:[#allocation5 + $0x48] sm:$0xff]  ;;  %v267_v39 = vld [vmem:[#allocation5 + $0x58] sm:$0xff] }
  0x31   :  { %522 = vmatpush3.bf16.msra.mxu1 %v519_v8  ;;  %548 = vmatprep.subr.bf16.mxu0 %v547_v30  ;;  %v553_v40 = vpack.c.bf16 %v262_v37, %v260_v36  ;;  %v555_v41 = vpack.c.bf16 %v267_v39, %v265_v38  ;;  %v264_v42 = vld [vmem:[#allocation5 + $0x40] sm:$0xff]  ;;  %v266_v43 = vld [vmem:[#allocation5 + $0x50] sm:$0xff]  ;;  %v269_v44 = vld [vmem:[#allocation5 + $0x68] sm:$0xff] }
  0x32   :  { %524 = vmatprep.subr.bf16.mxu1 %v523_v11  ;;  %550 = vmatpush1.bf16.msra.mxu0 %v549_v34  ;;  %v271_v45 = vld [vmem:[#allocation5 + $0x78] sm:$0xff]  ;;  %v557_v46 = vpack.c.bf16 %v266_v43, %v264_v42  ;;  %v268_v48 = vld [vmem:[#allocation5 + $0x60] sm:$0xff]  ;;  %v270_v49 = vld [vmem:[#allocation5 + $0x70] sm:$0xff] }
  0x33   :  { %552 = vmatprep.subr.bf16.mxu0 %v551_v35  ;;  %v559_v47 = vpack.c.bf16 %v271_v45, %v269_v44  ;;  %v273_v50 = vld [vmem:[#allocation5 + $0x88] sm:$0xff]  ;;  %v275_v51 = vld [vmem:[#allocation5 + $0x98] sm:$0xff]  ;;  %v561_v52 = vpack.c.bf16 %v270_v49, %v268_v48  ;;  %v272_v54 = vld [vmem:[#allocation5 + $0x80] sm:$0xff] }
  0x34   :  { %v563_v53 = vpack.c.bf16 %v275_v51, %v273_v50  ;;  %v274_v55 = vld [vmem:[#allocation5 + $0x90] sm:$0xff]  ;;  %v277_v56 = vld [vmem:[#allocation5 + $0xa8] sm:$0xff]  ;;  %v279_v57 = vld [vmem:[#allocation5 + $0xb8] sm:$0xff] }
  0x35   :  { %526 = vmatpush3.bf16.msra.mxu1 %v523_v11  ;;  %v565_v58 = vpack.c.bf16 %v274_v55, %v272_v54  ;;  %v567_v59 = vpack.c.bf16 %v279_v57, %v277_v56  ;;  %v276_v60 = vld [vmem:[#allocation5 + $0xa0] sm:$0xff]  ;;  %v278_v61 = vld [vmem:[#allocation5 + $0xb0] sm:$0xff]  ;;  %v281_v62 = vld [vmem:[#allocation5 + $0xc8] sm:$0xff] }
  0x36   :  { %528 = vmatprep.subr.bf16.mxu1 %v527_v14  ;;  %554 = vmatpush1.bf16.msra.mxu0 %v553_v40  ;;  %v283_v63 = vld [vmem:[#allocation5 + $0xd8] sm:$0xff]  ;;  %v569_v0 = vpack.c.bf16 %v278_v61, %v276_v60  ;;  %v280_v2 = vld [vmem:[#allocation5 + $0xc0] sm:$0xff]  ;;  %v282_v3 = vld [vmem:[#allocation5 + $0xd0] sm:$0xff] }
  0x37   :  { %556 = vmatprep.subr.bf16.mxu0 %v555_v41  ;;  %v571_v1 = vpack.c.bf16 %v283_v63, %v281_v62  ;;  %v573_v4 = vpack.c.bf16 %v282_v3, %v280_v2  ;;  %v446_v5 = vld [vmem:[%s794_s3] ss:$0 sm:$0xff]  ;;  %v285_v12 = vld [vmem:[#allocation5 + $0xe8] sm:$0xff]  ;;  %v287_v13 = vld [vmem:[#allocation5 + $0xf8] sm:$0xff] }
  0x38   :  { %v284_v15 = vld [vmem:[#allocation5 + $0xe0] sm:$0xff]  ;;  %v286_v16 = vld [vmem:[#allocation5 + $0xf0] sm:$0xff] }
  0x39   :  { %530 = vmatpush3.bf16.msra.mxu1 %v527_v14  ;;  %v575_v14 = vpack.c.bf16 %v287_v13, %v285_v12  ;;  %v449_v19 = vld [vmem:[%s796_s5] ss:$0 sm:$0xff] }
  0x3a   :  { %532 = vmatprep.subr.bf16.mxu1 %v531_v17  ;;  %558 = vmatpush1.bf16.msra.mxu0 %v557_v46  ;;  %v288_v29 = vld [vmem:[%s798_s7] sm:$0x3] }
  0x3b   :  { %560 = vmatprep.subr.bf16.mxu0 %v559_v47  ;;  %v451_v44 = vld [vmem:[%s792_s1] sm:$0xff]   ;;  %s678_s1 = smov [#allocation7]  }
  0x3c   :  { %v452_v46 = vunpack.c.l.bf16 %v451_v44  ;;  %v453_v51 = vunpack.c.h.bf16 %v451_v44  ;;  %s433_s7 = sshll.u32 %s678_s1, 4  ;;  %s434_s7 = int_to_ptr.vmem [resolvable:$true] %s433_s7 }
  0x3d   :  { %534 = vmatpush3.bf16.msra.mxu1 %v531_v17  ;;  %v577_v17 = vpack.c.bf16 %v286_v16, %v284_v15  ;;  %s643_s21 = scalar_lea.vmem %s434_s7, 256  ;;  %p648_p3 = scmp.lt.s32.totalorder %s434_s7, %s434_s7 }
  0x3e   :  { %536 = vmatprep.subr.bf16.mxu1 %v535_v20  ;;  %562 = vmatpush1.bf16.msra.mxu0 %v561_v52  ;;  %v407_v2 = vmul.f32 0.5, %v452_v46  ;;  %p644_p2 = scmp.ne.s32.totalorder %s434_s7, %s643_s21  ;;  %p649_p4 = scmp.lt.s32.totalorder %s643_s21, %s643_s21 }
  0x3f   :  { %564 = vmatprep.subr.bf16.mxu0 %v563_v53 }
  0x40   :  { %p650_p5 = por %p649_p4, %p648_p3 }
  0x41   :  { %538 = vmatpush3.bf16.msra.mxu1 %v535_v20 }
  0x42   :  { %540 = vmatprep.subr.bf16.mxu1 %v539_v23  ;;  %566 = vmatpush1.bf16.msra.mxu0 %v565_v58  ;;  %p651_p6 = pnand %p650_p5, %p644_p2 }
  0x43   :  { %568 = vmatprep.subr.bf16.mxu0 %v567_v59 }
  0x45   :  { %542 = vmatpush3.bf16.msra.mxu1 %v539_v23 }
  0x46   :  { %544 = vmatprep.subr.bf16.mxu1 %v543_v26  ;;  %570 = vmatpush1.bf16.msra.mxu0 %v569_v0 }
  0x47   :  { %572 = vmatprep.subr.bf16.mxu0 %v571_v1 }
  0x49   :  { %546 = vmatpush3.bf16.msra.mxu1 %v543_v26  ;;  %v290_v26 = vlaneseq }
  0x4a   :  { %574 = vmatpush1.bf16.msra.mxu0 %v573_v4  ;;  %v409_v4 = vmul.f32 %v452_v46, %v407_v2 }
  0x4b   :  { %576 = vmatprep.subr.bf16.mxu0 %v575_v14  ;;  %v291_v27 = vshrl.u32 %v290_v26, 7 }
  0x4d   :  { %v296_v28 = vsub.s32 1, %v291_v27  ;;  %v292_v43 = vsub.s32 0, %v291_v27 }
  0x4e   :  { %578 = vmatpush1.bf16.msra.mxu0 %v577_v17 }
  0x4f   :  { %v297_v30 = vrot.slane %v288_v29, %v296_v28  ;;  %v293_v45 = vrot.slane %v288_v29, %v292_v43 }
  0xfd   :  { %v479_v6 = vpop.f32.mrb[0].mxu1 }
  0xfe   :  { %v151_v7 = vadd.f32 %v479_v6, %v446_v5  ;;  %v145_v8 = vpop.f32.mrb[1].mxu1  ;;  %v416_v6 = vand.u32 127, %v290_v26 }
  0xff   :  { %v146_v9 = vadd.f32 %v446_v5, %v145_v8  ;;  %v408_v5 = vmul.f32 0.5, %v453_v51 }
 0x100   :  { %v155_v11 = vmax.f32 %v151_v7, 0.0  ;;  %vm417_vm1 = vcmp.lt.s32.totalorder %v416_v6, 4 }
 0x101   :  { %v154_v10 = vmax.f32 %v146_v9, 0.0 }
 0x103   :  { %512 = vmatprep.mubr.f32.mxu1 %v154_v10 }
 0x104   :  { %513 = vmatmul.mubr.f32.vlgmr.msra.gmra.mrb[2].mxu1 %v155_v11  ;;  %v410_v11 = vmul.f32 %v453_v51, %v408_v5 }
 0x1d7   :  { %v514_v20 = vpop.f32.mrb[2].mxu1 }
 0x1d8   :  { %v245_v21 = vpop.f32.mrb[3].mxu1  ;;  %v251_v23 = vadd.f32 %v514_v20, %v449_v19 }
 0x1d9   :  { %v246_v22 = vadd.f32 %v449_v19, %v245_v21 }
 0x1da   :  { %v255_v25 = vmax.f32 %v251_v23, 0.0 }
 0x1db   :  { %v254_v24 = vmax.f32 %v246_v22, 0.0 }
 0x1dd   :  { %365 = vmatmul.mubr.f32.vlgmr.msra.gmra.mrb[0].mxu0 %v254_v24 }
 0x1de   :  { %370 = vmatprep.mubr.f32.mxu0 %v677_v18 }
 0x1e1   :  { %371 = vmatmul.mubr.f32.gmra.mrb[2].mxu0 %v255_v25 }
 0x2b0   :  { %v366_v31 = vpop.f32.mrb[0].mxu0 }
 0x2b1   :  { %v368_v32 = vpop.f32.mrb[1].mxu0  ;;  %v367_v48 = vadd.f32 %v366_v31, %v293_v45 }
 0x2b2   :  { %v369_v33 = vadd.f32 %v368_v32, %v297_v30 }
 0x2b4   :  { %v377_v34 = vmax.f32 %v369_v33, -20.0  ;;  %v372_v35 = vpop.f32.mrb[2].mxu0 }
 0x2b5   :  { %v374_v36 = vpop.f32.mrb[3].mxu0  ;;  %v373_v53 = vadd.f32 %v372_v35, %v293_v45 }
 0x2b6   :  { %v379_v37 = vmin.f32 %v377_v34, 2.0  ;;  %v375_v38 = vadd.f32 %v374_v36, %v297_v30 }
 0x2b8   :  { %v381_v39 = vmul.f32 1.442695, %v379_v37  ;;  %v378_v40 = vmax.f32 %v375_v38, -20.0  ;;  %v405_v3 = vsub.f32 -0.9189385, %v379_v37 }
 0x2ba   :  { %587 = vpow2.f32 %v381_v39  ;;  %v380_v41 = vmin.f32 %v378_v40, 2.0  ;;  %v411_v10 = vsub.f32 %v405_v3, %v409_v4 }
 0x2bc   :  { %v383_v42 = vmul.f32 1.442695, %v380_v41  ;;  %v406_v8 = vsub.f32 -0.9189385, %v380_v41 }
 0x2be   :  { %589 = vpow2.f32 %v383_v42  ;;  %v412_v16 = vsub.f32 %v406_v8, %v410_v11 }
 0x2c4   :  { %v588_v47 = vpop.eup %587 }
 0x2c5   :  { %v385_v49 = vmul.f32 %v588_v47, %v452_v46 }
 0x2c7   :  { %v387_v50 = vadd.f32 %v385_v49, %v367_v48 }
 0x2c8   :  { %v590_v52 = vpop.eup %589 }
 0x2c9   :  { %591 = vtanh.f32 %v387_v50  ;;  %v386_v54 = vmul.f32 %v590_v52, %v453_v51 }
 0x2cb   :  { %v388_v55 = vadd.f32 %v386_v54, %v373_v53 }
 0x2cd   :  { %593 = vtanh.f32 %v388_v55 }
 0x2d3   :  { %v592_v56 = vpop.eup %591 }
 0x2d4   :  { %v393_v57 = vmul.f32 %v592_v56, %v592_v56  ;;  %v391_v19 = vmul.f32 2.0, %v592_v56 }
 0x2d6   :  { %v395_v58 = vsub.f32 1.0, %v393_v57 }
 0x2d7   :  { %v594_v59 = vpop.eup %593 }
 0x2d8   :  { %v397_v60 = vmul.f32 2.0, %v395_v58  ;;  %v394_v61 = vmul.f32 %v594_v59, %v594_v59  ;;  %v392_v22 = vmul.f32 2.0, %v594_v59 }
 0x2da   :  { %v399_v62 = vadd.f32 1e-06, %v397_v60  ;;  %v396_v63 = vsub.f32 1.0, %v394_v61 }
 0x2dc   :  { %595 = vlog2.f32 %v399_v62  ;;  %v398_v0 = vmul.f32 2.0, %v396_v63 }
 0x2de   :  { %v400_v1 = vadd.f32 1e-06, %v398_v0 }
 0x2e0   :  { %597 = vlog2.f32 %v400_v1 }
 0x2e6   :  { %v596_v7 = vpop.eup %595 }
 0x2e7   :  { %v402_v9 = vmul.f32 0.6931472, %v596_v7 }
 0x2e9   :  { %v413_v12 = vsub.f32 %v411_v10, %v402_v9 }
 0x2ea   :  { %v598_v13 = vpop.eup %597 }
 0x2eb   :  { %v418_v14 = vsel %vm417_vm1, %v413_v12, 0.0  ;;  %v404_v15 = vmul.f32 0.6931472, %v598_v13 }
 0x2ec   :  { %420 = vadd.xlane.f32.xlu0 %v418_v14 }
 0x2ed   :  { %v414_v17 = vsub.f32 %v412_v16, %v404_v15 }
 0x2ef   :  { %v419_v18 = vsel %vm417_vm1, %v414_v17, 0.0 }
 0x2f0   :  { %422 = vadd.xlane.f32.xlu0 %v419_v18 }
 0x379   :  { %v421_v20 = vpop.xlane.xlu0 %420 }
 0x37a   :  { %v424_v21 = vsel %vm417_vm1, %v391_v19, %v421_v20 }
 0x37b   :  { %426 = vst [vmem:[#allocation7] sm:$0xff] %v424_v21 }
 0x37d   :  { %v423_v23 = vpop.xlane.xlu0 %422 }
 0x37e   :  { %v425_v24 = vsel %vm417_vm1, %v392_v22, %v423_v23 }
 0x37f   :  { %427 = vst [vmem:[#allocation7 + $0x8] sm:$0xff] %v425_v24 }
 0x380   :  { %654 = shalt.err (!%p651_p6)
}
 0x381   :  { %s655_s24 = scalar_lea.hbm %s799_s8, 256 }
 0x382   :  { %p656_p7 = scmp.ne.s32.totalorder %s799_s8, %s655_s24  ;;  %p659_p8 = scmp.lt.u32.totalorder %s655_s24, %s799_s8 }
 0x384   :  { %p661_p9 = pnand %p659_p8, %p656_p7 }
 0x386   :  { %664 = shalt.err (!%p661_p9)
}
 0x387   :  { %439 = dma.vmem_to_hbm [thread:$0]  %s434_s7, 256, %s799_s8, [#allocation4], %s672_s15, %s672_s15, %s673_s16  }
 0x388   :  { %669 = dma.done.wait [#allocation4], 256  }
 0x389   :  { %670 = vsyncadd [#allocation4], 4294967040 }
 0x38a   :  { %443 = vsyncpa [#allocation3], 1 }
 0x38b   :  { %444 = vsyncpa [#allocation6], 1 }
 0x38c   :  { %445 = vsyncpa [#allocation4], 1 }

</bundles_post_ra>
